<compile_context>
chip_gen: v6e
topology: v6e:2x2x1
jax: 0.10.0
libtpu: 0.0.40
codegen_flags: <defaults>
</compile_context>

<pallas_src>
import jax
import jax.numpy as jnp
from jax import lax
from jax.experimental import pallas as pl
from jax.experimental.pallas import tpu as pltpu

# ---- module hyperparameters (from __init__) ---------------------------------
INPUT_DIM = 16
OUTPUT_DIM = 8
HIDDEN_SIZES = (32, 32)
INIT_STD = 1.0          # stored directly as log_std (the torch code stores plain values)
MIN_STD = 0.1           # clamp applied directly to log_std_uncentered, as in the torch forward
MAX_STD = 2.0
STD_PARAMETERIZATION = "exp"   # {'exp', 'softplus'}


def _pick_compute_dtype():
    """bf16 operands/tanh on v6e/v7x; f32 on v5e (no bf16 VPU/EUP there)."""
    kind = jax.devices()[0].device_kind.lower()
    return jnp.float32 if "v5" in kind else jnp.bfloat16


def _make_mean_mlp_kernel(compute_dtype):
    def kernel(x_ref, w1_ref, b1_ref, w2_ref, b2_ref, w3_ref, b3_ref, out_ref):
        """Transposed-dataflow MLP mean head.

        x_ref  : [TB, INPUT_DIM]  f32   (natural layout; cast in-kernel)
        w*_ref : [out_f, in_f]    compute_dtype (VMEM-resident)
        b1/b2  : [out_f, 1]       f32   (column bias: broadcast over lanes)
        b3     : [1, OUTPUT_DIM]  f32   (row bias for natural-layout output)
        out_ref: [TB, OUTPUT_DIM] f32
        """
        x = x_ref[...].astype(compute_dtype)                 # [TB, IN]

        # h1^T = W1 @ x^T  (contract in_dim against in_dim) -> [H1, TB]
        # Batch sits on the lane axis: intermediates & tanh are lane-dense.
        h1 = lax.dot_general(w1_ref[...], x, (((1,), (1,)), ((), ())),
                             preferred_element_type=jnp.float32) + b1_ref[...]
        h1 = jnp.tanh(h1.astype(compute_dtype))              # [H1, TB]

        h2 = jnp.dot(w2_ref[...], h1,
                     preferred_element_type=jnp.float32) + b2_ref[...]
        h2 = jnp.tanh(h2.astype(compute_dtype))              # [H2, TB]

        # mean = h2^T @ W3^T  -> [TB, OUT] directly in the natural output layout.
        mean = lax.dot_general(h2, w3_ref[...], (((0,), (1,)), ((), ())),
                               preferred_element_type=jnp.float32) + b3_ref[...]
        out_ref[...] = mean.astype(out_ref.dtype)
    return kernel


def gaussian_mlp_forward(x, params, *, std_param=STD_PARAMETERIZATION,
                         block_batch=2048, compute_dtype=None):
    """Returns (mean, std) of the Independent(Normal) distribution."""
    w1, b1, w2, b2, w3, b3, log_std = params
    if compute_dtype is None:
        compute_dtype = _pick_compute_dtype()

    batch, in_dim = x.shape
    h1_dim = w1.shape[0]
    h2_dim = w2.shape[0]
    out_dim = w3.shape[0]

    # 128-aligned batch tile; cap at ~half the batch so the grid has >=2 steps
    # (v7x megacore). No explicit padding: Pallas masks the ragged last block.
    block_batch = max(128, (block_batch // 128) * 128)
    half = max(128, pl.cdiv(pl.cdiv(batch, 2), 128) * 128)
    tb = min(block_batch, half)
    grid = (pl.cdiv(batch, tb),)

    w1c = w1.astype(compute_dtype)
    w2c = w2.astype(compute_dtype)
    w3c = w3.astype(compute_dtype)

    const = lambda i: (0, 0)   # weights/biases: VMEM-resident, DMA'd once

    mean = pl.pallas_call(
        _make_mean_mlp_kernel(compute_dtype),
        out_shape=jax.ShapeDtypeStruct((batch, out_dim), jnp.float32),
        grid_spec=pltpu.PrefetchScalarGridSpec(
            num_scalar_prefetch=0,
            grid=grid,
            in_specs=[
                pl.BlockSpec((tb, in_dim), lambda i: (i, 0)),   # x batch tile
                pl.BlockSpec((h1_dim, in_dim), const),
                pl.BlockSpec((h1_dim, 1), const),
                pl.BlockSpec((h2_dim, h1_dim), const),
                pl.BlockSpec((h2_dim, 1), const),
                pl.BlockSpec((out_dim, h2_dim), const),
                pl.BlockSpec((1, out_dim), const),
            ],
            out_specs=pl.BlockSpec((tb, out_dim), lambda i: (i, 0)),
        ),
        compiler_params=pltpu.CompilerParams(
            dimension_semantics=("parallel",),
            vmem_limit_bytes=32 * 1024 * 1024,
        ),
    )(x, w1c, b1, w2c, b2, w3c, b3)

    # std is independent of x: compute once on the (1, out_dim) parameter and
    # broadcast outside the kernel. Clamp uses plain-valued bounds, faithful
    # to the torch forward().
    ls = jnp.clip(log_std, MIN_STD, MAX_STD)
    if std_param == "exp":
        std_vec = jnp.exp(ls)
    else:   # faithful to torch: log_std.exp().exp().add(1.0).log()
        std_vec = jnp.log(jnp.exp(jnp.exp(ls)) + 1.0)
    std = jnp.broadcast_to(std_vec, (batch, out_dim))

    # TODO(synk): torch.distributions.Independent(Normal(mean, std), 1) is a
    # host-side container; we return its (mean, std) parameters instead.
    return mean, std


def init_params(key):
    """Deterministic init: xavier-uniform weights [out_f, in_f] f32, zero
    biases (columns for hidden layers, row for the output layer),
    log_std = init_std per output dim."""
    sizes = (INPUT_DIM,) + HIDDEN_SIZES + (OUTPUT_DIM,)
    keys = jax.random.split(key, len(sizes) - 1)
    params = []
    n_layers = len(sizes) - 1
    for li, (k, fan_in, fan_out) in enumerate(zip(keys, sizes[:-1], sizes[1:])):
        bound = jnp.sqrt(6.0 / (fan_in + fan_out))
        w = jax.random.uniform(k, (fan_in, fan_out), jnp.float32, -bound, bound)
        params.append(w.T)                                     # [out_f, in_f] f32
        if li == n_layers - 1:
            params.append(jnp.zeros((1, fan_out), jnp.float32))    # output bias: row
        else:
            params.append(jnp.zeros((fan_out, 1), jnp.float32))    # hidden bias: column
    log_std = jnp.full((1, OUTPUT_DIM), INIT_STD, jnp.float32)
    params.append(log_std)
    return tuple(params)


def reference_forward(x, params, compute_dtype):
    """Pure-JAX reference mirroring the kernel's operand/tanh precision."""
    w1, b1, w2, b2, w3, b3, log_std = params
    xc = x.astype(compute_dtype)
    h1 = jnp.tanh((jnp.dot(xc, w1.astype(compute_dtype).T,
                           preferred_element_type=jnp.float32)
                   + b1.T).astype(compute_dtype))
    h2 = jnp.tanh((jnp.dot(h1, w2.astype(compute_dtype).T,
                           preferred_element_type=jnp.float32)
                   + b2.T).astype(compute_dtype))
    mean = jnp.dot(h2, w3.astype(compute_dtype).T,
                   preferred_element_type=jnp.float32) + b3
    ls = jnp.clip(log_std, MIN_STD, MAX_STD)
    if STD_PARAMETERIZATION == "exp":
        std_vec = jnp.exp(ls)
    else:
        std_vec = jnp.log(jnp.exp(jnp.exp(ls)) + 1.0)
    return mean, jnp.broadcast_to(std_vec, mean.shape)


if __name__ == "__main__":
    key = jax.random.PRNGKey(0)
    k_x, k_p = jax.random.split(key)

    batch = 300   # deliberately not a multiple of 128 to exercise ragged last block
    x = jax.random.normal(k_x, (batch, INPUT_DIM), jnp.float32)
    params = init_params(k_p)

    compute_dtype = _pick_compute_dtype()
    mean, std = gaussian_mlp_forward(x, params, compute_dtype=compute_dtype)
    jax.block_until_ready((mean, std))

    ref_mean, ref_std = reference_forward(x, params, compute_dtype)
    assert mean.shape == (batch, OUTPUT_DIM) and std.shape == (batch, OUTPUT_DIM)
    assert jnp.allclose(mean, ref_mean, atol=1e-2, rtol=1e-2)
    assert jnp.allclose(std, ref_std, atol=1e-6, rtol=1e-6)

    print("KERNEL_OK")
</pallas_src>

<mosaic_0001>
module attributes {stable_mosaic.version = 11 : i64} {
  func.func @kernel(%arg0: i32, %arg1: memref<256x16xf32, #tpu.memory_space<vmem>>, %arg2: memref<32x16xbf16, #tpu.memory_space<vmem>>, %arg3: memref<32x1xf32, #tpu.memory_space<vmem>>, %arg4: memref<32x32xbf16, #tpu.memory_space<vmem>>, %arg5: memref<32x1xf32, #tpu.memory_space<vmem>>, %arg6: memref<8x32xbf16, #tpu.memory_space<vmem>>, %arg7: memref<1x8xf32, #tpu.memory_space<vmem>>, %arg8: memref<256x8xf32, #tpu.memory_space<vmem>>) attributes {dimension_semantics = [#tpu.dimension_semantics<parallel>], iteration_bounds = array<i64: 2>, scalar_prefetch = 0 : i64, scratch_operands = 0 : i64, tpu.core_type = #tpu.core_type<tc>, window_params = [{transform_indices = @transform_0, window_bounds = array<i64: 256, 16>}, {pipeline_mode = #tpu.pipeline_mode<synchronous>, transform_indices = @transform_1, window_bounds = array<i64: 32, 16>}, {pipeline_mode = #tpu.pipeline_mode<synchronous>, transform_indices = @transform_2, window_bounds = array<i64: 32, 1>}, {pipeline_mode = #tpu.pipeline_mode<synchronous>, transform_indices = @transform_3, window_bounds = array<i64: 32, 32>}, {pipeline_mode = #tpu.pipeline_mode<synchronous>, transform_indices = @transform_4, window_bounds = array<i64: 32, 1>}, {pipeline_mode = #tpu.pipeline_mode<synchronous>, transform_indices = @transform_5, window_bounds = array<i64: 8, 32>}, {pipeline_mode = #tpu.pipeline_mode<synchronous>, transform_indices = @transform_6, window_bounds = array<i64: 1, 8>}, {transform_indices = @transform_7, window_bounds = array<i64: 256, 8>}]} {
    %c0 = arith.constant 0 : index
    %c0_0 = arith.constant 0 : index
    %0 = vector.load %arg1[%c0, %c0_0] : memref<256x16xf32, #tpu.memory_space<vmem>>, vector<256x16xf32>
    %1 = arith.truncf %0 : vector<256x16xf32> to vector<256x16xbf16>
    %c0_1 = arith.constant 0 : index
    %c0_2 = arith.constant 0 : index
    %2 = vector.load %arg2[%c0_1, %c0_2] : memref<32x16xbf16, #tpu.memory_space<vmem>>, vector<32x16xbf16>
    %cst = arith.constant dense<0.000000e+00> : vector<32x256xf32>
    %3 = tpu.matmul %2, %1, %cst {dimension_numbers = #tpu.dot_dimension_numbers<[1], [1], [0], [0], [0, 0, 1, 0], [], []>} : vector<32x16xbf16>, vector<256x16xbf16>, vector<32x256xf32> -> vector<32x256xf32>
    %c0_3 = arith.constant 0 : index
    %c0_4 = arith.constant 0 : index
    %4 = vector.load %arg3[%c0_3, %c0_4] : memref<32x1xf32, #tpu.memory_space<vmem>>, vector<32x1xf32>
    %5 = vector.broadcast %4 : vector<32x1xf32> to vector<32x256xf32>
    %6 = arith.addf %3, %5 : vector<32x256xf32>
    %7 = arith.truncf %6 : vector<32x256xf32> to vector<32x256xbf16>
    %8 = math.tanh %7 : vector<32x256xbf16>
    %c0_5 = arith.constant 0 : index
    %c0_6 = arith.constant 0 : index
    %9 = vector.load %arg4[%c0_5, %c0_6] : memref<32x32xbf16, #tpu.memory_space<vmem>>, vector<32x32xbf16>
    %cst_7 = arith.constant dense<0.000000e+00> : vector<32x256xf32>
    %10 = tpu.matmul %9, %8, %cst_7 {dimension_numbers = #tpu.dot_dimension_numbers<[1], [0], [0], [1], [0, 0, 1, 1], [], []>} : vector<32x32xbf16>, vector<32x256xbf16>, vector<32x256xf32> -> vector<32x256xf32>
    %c0_8 = arith.constant 0 : index
    %c0_9 = arith.constant 0 : index
    %11 = vector.load %arg5[%c0_8, %c0_9] : memref<32x1xf32, #tpu.memory_space<vmem>>, vector<32x1xf32>
    %12 = vector.broadcast %11 : vector<32x1xf32> to vector<32x256xf32>
    %13 = arith.addf %10, %12 : vector<32x256xf32>
    %14 = arith.truncf %13 : vector<32x256xf32> to vector<32x256xbf16>
    %15 = math.tanh %14 : vector<32x256xbf16>
    %c0_10 = arith.constant 0 : index
    %c0_11 = arith.constant 0 : index
    %16 = vector.load %arg6[%c0_10, %c0_11] : memref<8x32xbf16, #tpu.memory_space<vmem>>, vector<8x32xbf16>
    %cst_12 = arith.constant dense<0.000000e+00> : vector<256x8xf32>
    %17 = tpu.matmul %15, %16, %cst_12 {dimension_numbers = #tpu.dot_dimension_numbers<[0], [1], [1], [0], [0, 1, 1, 0], [], []>} : vector<32x256xbf16>, vector<8x32xbf16>, vector<256x8xf32> -> vector<256x8xf32>
    %c0_13 = arith.constant 0 : index
    %c0_14 = arith.constant 0 : index
    %18 = vector.load %arg7[%c0_13, %c0_14] : memref<1x8xf32, #tpu.memory_space<vmem>>, vector<1x8xf32>
    %19 = vector.broadcast %18 : vector<1x8xf32> to vector<256x8xf32>
    %20 = arith.addf %17, %19 : vector<256x8xf32>
    %c0_15 = arith.constant 0 : index
    %c0_16 = arith.constant 0 : index
    %21 = vector.load %arg8[%c0_15, %c0_16] : memref<256x8xf32, #tpu.memory_space<vmem>>, vector<256x8xf32>
    tpu.vector_store %arg8[%c0_15, %c0_16], %20 {strides = array<i32>} : memref<256x8xf32, #tpu.memory_space<vmem>>, vector<256x8xf32>,
    return
  }
  func.func @transform_0(%arg0: i32) -> (i32, i32) {
    %c0_i32 = arith.constant 0 : i32
    %c0_i32_0 = arith.constant 0 : i32
    return %arg0, %c0_i32 : i32, i32
  }
  func.func @transform_1(%arg0: i32) -> (i32, i32) {
    %c0_i32 = arith.constant 0 : i32
    %c0_i32_0 = arith.constant 0 : i32
    %c0_i32_1 = arith.constant 0 : i32
    return %c0_i32, %c0_i32_0 : i32, i32
  }
  func.func @transform_2(%arg0: i32) -> (i32, i32) {
    %c0_i32 = arith.constant 0 : i32
    %c0_i32_0 = arith.constant 0 : i32
    %c0_i32_1 = arith.constant 0 : i32
    return %c0_i32, %c0_i32_0 : i32, i32
  }
  func.func @transform_3(%arg0: i32) -> (i32, i32) {
    %c0_i32 = arith.constant 0 : i32
    %c0_i32_0 = arith.constant 0 : i32
    %c0_i32_1 = arith.constant 0 : i32
    return %c0_i32, %c0_i32_0 : i32, i32
  }
  func.func @transform_4(%arg0: i32) -> (i32, i32) {
    %c0_i32 = arith.constant 0 : i32
    %c0_i32_0 = arith.constant 0 : i32
    %c0_i32_1 = arith.constant 0 : i32
    return %c0_i32, %c0_i32_0 : i32, i32
  }
  func.func @transform_5(%arg0: i32) -> (i32, i32) {
    %c0_i32 = arith.constant 0 : i32
    %c0_i32_0 = arith.constant 0 : i32
    %c0_i32_1 = arith.constant 0 : i32
    return %c0_i32, %c0_i32_0 : i32, i32
  }
  func.func @transform_6(%arg0: i32) -> (i32, i32) {
    %c0_i32 = arith.constant 0 : i32
    %c0_i32_0 = arith.constant 0 : i32
    %c0_i32_1 = arith.constant 0 : i32
    return %c0_i32, %c0_i32_0 : i32, i32
  }
  func.func @transform_7(%arg0: i32) -> (i32, i32) {
    %c0_i32 = arith.constant 0 : i32
    %c0_i32_0 = arith.constant 0 : i32
    return %arg0, %c0_i32 : i32, i32
  }
}

</mosaic_0001>

<bundles_post_ra>
// kernel: tpu_custom_call.1
= control target key start
LH: loop header
LB: loop body
LE: loop exit
PB: predicated region body
PF: predicated region fallthrough
CT: control target
= control target key end

     0   :  { %s1606_s24 = smov 0   ;;  %s1608_s25 = smov 0   ;;  %s2007_s0 = inlined_call_operand.vmem [shape: f32[300,16], index: 0, kind: input, shape index: {}]   ;;  %s2008_s1 = inlined_call_operand.vmem [shape: bf16[32,16], index: 1, kind: input, shape index: {}]   ;;  %s2009_s2 = inlined_call_operand.vmem [shape: f32[32,1], index: 2, kind: input, shape index: {}]   ;;  %s2010_s3 = inlined_call_operand.vmem [shape: bf16[32,32], index: 3, kind: input, shape index: {}]   ;;  %s2011_s4 = inlined_call_operand.vmem [shape: f32[32,1], index: 4, kind: input, shape index: {}]   ;;  %s2012_s5 = inlined_call_operand.vmem [shape: bf16[8,32], index: 5, kind: input, shape index: {}]   ;;  %s2013_s6 = inlined_call_operand.vmem [shape: f32[1,8], index: 6, kind: input, shape index: {}]   ;;  %s2014_s7 = inlined_call_operand.vmem [shape: f32[300,8], index: 7, kind: output, shape index: {}]  }
   0x1   :  { %s1610_s26 = smov 0  }
   0x2 LB: > { %s1619_s27 = sadd.s32 4294967295, %s1531_s26   ;;  %s1621_s28 = sadd.s32 1, %s1531_s26   ;;  %s1531_s26 = sphi %s1610_s26, %s2023_s26   ;;  %s1527_s25 = sphi %s1608_s25, %s2022_s25   ;;  %s1523_s24 = sphi %s1606_s24, %s2021_s24  }
   0x3   : > { %s173_s29 = ssub.s32 %s1531_s26, %s1621_s28  ;;  %s176_s30 = sadd.s32 1, %s1527_s25 }
   0x4   : > { %p174_p0 = scmp.eq.s32.totalorder %s173_s29, 0  ;;  %p186_p1 = scmp.ne.s32.totalorder %s1527_s25, %s1523_s24 }
   0x5   : > { %p187_p2 = scmp.eq.s32.totalorder %s1619_s27, 1  ;;  %p1237_p3 = scmp.ge.s32.totalorder %s1531_s26, 1 }
   0x6   : > { %s1629_s8 = scalar_select %p174_p0, %s1527_s25, %s176_s30  }
   0x7   : > { %p1631_p4 = por %p187_p2, %p186_p1  ;;  %p246_p5 = scmp.lt.s32.totalorder %s1531_s26, 3 }
   0x9   : > { %p247_p6 = pnand %p1237_p3, %p246_p5 }
   0xa   : > { %s1636_s10 = sshll.u32 (!%p247_p6), %s1619_s27, 5  ;;  %s278_s30 = sand.u32 (!%p247_p6), 1, %s1523_s24  }
   0xb   : > { %250 = sbr.rel (%p247_p6) target bundleno = 951 (0x3b7), region = 48  ;;  %p286_p7 = scmp.lt.s32.totalorder (!%p247_p6), %s1636_s10, 37 }
   0xc   : > { %s1238_s11 = sshll.u32 (!%p247_p6), %s278_s30, 8 }
   0xd   : > { %s1771_s14 = scalar_lea.vmem (!%p247_p6), [#allocation2], %s1238_s11  }
  0x10   : > { %v1642_v0 = vld [vmem:[%s2008_s1] sm:$0xff]   ;;  %vm387_vm0 = vcmask 130048   ;;  %v355_v1 = vld [vmem:[%s2009_s2 + $0x10] sm:$0xff]  ;;  %s287_s17 = scalar_select %p286_p7, %s1636_s10, 37  ;;  %v1565_v3 = vmov 0   ;;  %v356_v4 = vld [vmem:[%s2009_s2 + $0x18] sm:$0xff] }
  0x11   : > { %v353_v2 = vld [vmem:[%s2009_s2] sm:$0xff]  ;;  %1302 = vmatprep.mubr.msk.bf16.mxu0 %vm387_vm0, %v1642_v0  ;;  %1455 = vset.pattern.permute.xlu0 %v1565_v3  ;;  %v354_v5 = vld [vmem:[%s2009_s2 + $0x8] sm:$0xff]  ;;  %v509_v21 = vld [vmem:[%s2011_s4 + $0x10] sm:$0xff]  ;;  %vm541_vm1 = vcmask 261120   ;;  %vm861_vm2 = vcmask 64512   ;;  %s902_s24 = ssub.s32 (%p1631_p4), 38, %s1636_s10 }
  0x12   : > { %369 = vperm.xlu0 %1455, %v355_v1   ;;  %1456 = vset.pattern.permute.xlu1 %v1565_v3  ;;  %s1240_s18 = sshll.u32 %s287_s17, 3  ;;  %v507_v15 = vld [vmem:[%s2011_s4] sm:$0xff]  ;;  %v508_v18 = vld [vmem:[%s2011_s4 + $0x8] sm:$0xff]  ;;  %v510_v24 = vld [vmem:[%s2011_s4 + $0x18] sm:$0xff]  ;;  %s1283_s15 = sshll.u32 (%p1631_p4), %s1619_s27, 8 }
  0x13   : > { %359 = vperm.xlu1 %1456, %v353_v2   ;;  %580 = vmatprep.mubr.bf16.mxu1 %v1565_v3  ;;  %s1662_s23 = scalar_lea.vmem %s2007_s0, %s1240_s18  ;;  %p903_p8 = scmp.lt.s32.totalorder (%p1631_p4), %s902_s24, 32 }
  0x14   : > { %v331_v6 = vld [vmem:[%s1662_s23 + $0xf0] sm:$0xff]  ;;  %v332_v7 = vld [vmem:[%s1662_s23 + $0xf8] sm:$0xff]  ;;  %v329_v11 = vld [vmem:[%s1662_s23 + $0xe0] sm:$0xff]  ;;  %s1875_s18 = scalar_lea.vmem (%p1631_p4), %s2014_s7, %s1283_s15  }
  0x15   : > { %v315_v8 = vld [vmem:[%s1662_s23 + $0x70] sm:$0xff]  ;;  %v348_v9 = vpack.c.bf16 %v332_v7, %v331_v6  ;;  %v316_v10 = vld [vmem:[%s1662_s23 + $0x78] sm:$0xff]  ;;  %v330_v12 = vld [vmem:[%s1662_s23 + $0xe8] sm:$0xff] }
  0x16   : > { %374 = vperm.xlu0 %1455, %v356_v4   ;;  %v340_v13 = vpack.c.bf16 %v316_v10, %v315_v8  ;;  %v347_v14 = vpack.c.bf16 %v330_v12, %v329_v11  ;;  %v313_v16 = vld [vmem:[%s1662_s23 + $0x60] sm:$0xff]  ;;  %v314_v17 = vld [vmem:[%s1662_s23 + $0x68] sm:$0xff]  ;;  %v327_v22 = vld [vmem:[%s1662_s23 + $0xd0] sm:$0xff] }
  0x17   : > { %364 = vperm.xlu1 %1456, %v354_v5   ;;  %1357 = vmatprep.subr.msk.bf16.mxu0 %vm387_vm0, %v348_v9  ;;  %v339_v20 = vpack.c.bf16 %v314_v17, %v313_v16  ;;  %v328_v23 = vld [vmem:[%s1662_s23 + $0xd8] sm:$0xff]  ;;  %v311_v27 = vld [vmem:[%s1662_s23 + $0x50] sm:$0xff]  ;;  %v325_v30 = vld [vmem:[%s1662_s23 + $0xc0] sm:$0xff] }
  0x18   : > { %v416_v19 = vsel %vm387_vm0, %v340_v13, 0  ;;  %v346_v26 = vpack.c.bf16 %v328_v23, %v327_v22  ;;  %v312_v28 = vld [vmem:[%s1662_s23 + $0x58] sm:$0xff]  ;;  %v326_v31 = vld [vmem:[%s1662_s23 + $0xc8] sm:$0xff]  ;;  %v309_v34 = vld [vmem:[%s1662_s23 + $0x40] sm:$0xff] }
  0x19   : > { %1287 = vmatpush3.bf16.xpose.msra.mxu0 %v416_v19  ;;  %v413_v25 = vsel %vm387_vm0, %v339_v20, 0  ;;  %v338_v29 = vpack.c.bf16 %v312_v28, %v311_v27  ;;  %v345_v33 = vpack.c.bf16 %v326_v31, %v325_v30  ;;  %v310_v35 = vld [vmem:[%s1662_s23 + $0x48] sm:$0xff]  ;;  %v323_v37 = vld [vmem:[%s1662_s23 + $0xb0] sm:$0xff]  ;;  %v324_v38 = vld [vmem:[%s1662_s23 + $0xb8] sm:$0xff] }
  0x1a   : > { %513 = vperm.xlu0 %1455, %v507_v15   ;;  %1358 = vmatprep.subr.msk.bf16.mxu0 %vm387_vm0, %v347_v14  ;;  %v337_v36 = vpack.c.bf16 %v310_v35, %v309_v34  ;;  %v344_v40 = vpack.c.bf16 %v324_v38, %v323_v37  ;;  %v307_v41 = vld [vmem:[%s1662_s23 + $0x30] sm:$0xff]  ;;  %v308_v42 = vld [vmem:[%s1662_s23 + $0x38] sm:$0xff]  ;;  %v321_v44 = vld [vmem:[%s1662_s23 + $0xa0] sm:$0xff] }
  0x1b   : > { %518 = vperm.xlu1 %1456, %v508_v18   ;;  %v410_v32 = vsel %vm387_vm0, %v338_v29, 0  ;;  %v336_v43 = vpack.c.bf16 %v308_v42, %v307_v41  ;;  %v322_v45 = vld [vmem:[%s1662_s23 + $0xa8] sm:$0xff]  ;;  %v305_v48 = vld [vmem:[%s1662_s23 + $0x20] sm:$0xff]  ;;  %v319_v51 = vld [vmem:[%s1662_s23 + $0x90] sm:$0xff] }
  0x1c   : > { %v407_v39 = vsel %vm387_vm0, %v337_v36, 0  ;;  %v343_v47 = vpack.c.bf16 %v322_v45, %v321_v44  ;;  %v306_v49 = vld [vmem:[%s1662_s23 + $0x28] sm:$0xff]  ;;  %v320_v52 = vld [vmem:[%s1662_s23 + $0x98] sm:$0xff]  ;;  %v303_v55 = vld [vmem:[%s1662_s23 + $0x10] sm:$0xff] }
  0x1d   : > { %v404_v46 = vsel %vm387_vm0, %v336_v43, 0  ;;  %v335_v50 = vpack.c.bf16 %v306_v49, %v305_v48  ;;  %v342_v54 = vpack.c.bf16 %v320_v52, %v319_v51  ;;  %v304_v56 = vld [vmem:[%s1662_s23 + $0x18] sm:$0xff]  ;;  %v317_v58 = vld [vmem:[%s1662_s23 + $0x80] sm:$0xff]  ;;  %v318_v59 = vld [vmem:[%s1662_s23 + $0x88] sm:$0xff] }
  0x1e   : > { %523 = vperm.xlu0 %1455, %v509_v21   ;;  %v334_v57 = vpack.c.bf16 %v304_v56, %v303_v55  ;;  %v341_v61 = vpack.c.bf16 %v318_v59, %v317_v58  ;;  %v301_v62 = vld [vmem:[%s1662_s23] sm:$0xff]  ;;  %v302_v63 = vld [vmem:[%s1662_s23 + $0x8] sm:$0xff] }
  0x1f   : > { %528 = vperm.xlu1 %1456, %v510_v24   ;;  %v401_v53 = vsel %vm387_vm0, %v335_v50, 0  ;;  %v333_v1 = vpack.c.bf16 %v302_v63, %v301_v62  ;;  %v1458_v4 = vld [vmem:[%s2008_s1 + $0x8] sm:$0xff]   ;;  %v609_v34 = vld [vmem:[%s2012_s5] sm:$0xf] }
  0x20   : > { %v398_v60 = vsel %vm387_vm0, %v334_v57, 0  ;;  %v698_v35 = vsel %vm541_vm1, %v609_v34, 0 }
  0x21   : > { %1289 = vmatpush3.bf16.xpose.msra.mxu0 %v413_v25  ;;  %v395_v2 = vsel %vm387_vm0, %v333_v1, 0 }
  0x22   : > { %1359 = vmatprep.subr.msk.bf16.mxu0 %vm387_vm0, %v346_v26 }
  0x29   : > { %1291 = vmatpush3.bf16.xpose.msra.mxu0 %v410_v32  ;;  %v1459_v32 = vld [vmem:[%s2010_s3] sm:$0xff]  }
  0x2a   : > { %1360 = vmatprep.subr.msk.bf16.mxu0 %vm387_vm0, %v345_v33  ;;  %v1460_v33 = vld [vmem:[%s2010_s3 + $0x8] sm:$0xff]  }
  0x31   : > { %1293 = vmatpush3.bf16.xpose.msra.mxu0 %v407_v39 }
  0x32   : > { %1361 = vmatprep.subr.msk.bf16.mxu0 %vm387_vm0, %v344_v40 }
  0x39   : > { %1295 = vmatpush3.bf16.xpose.msra.mxu0 %v404_v46 }
  0x3a   : > { %1362 = vmatprep.subr.msk.bf16.mxu0 %vm387_vm0, %v343_v47 }
  0x41   : > { %1297 = vmatpush3.bf16.xpose.msra.mxu0 %v401_v53 }
  0x42   : > { %1363 = vmatprep.subr.msk.bf16.mxu0 %vm387_vm0, %v342_v54 }
  0x49   : > { %1299 = vmatpush3.bf16.xpose.msra.mxu0 %v398_v60 }
  0x4a   : > { %1364 = vmatprep.subr.msk.bf16.mxu0 %vm387_vm0, %v341_v61 }
  0x51   : > { %1301 = vmatpush3.bf16.xpose.msra.mxu0 %v395_v2 }
  0x58   : > { %1303 = vmatmul.mubr.msk.bf16.vlgmr.msra.gmra.mxu0 %vm387_vm0, %v1642_v0 }
  0x59   : > { %1304 = vmatprep.mubr.msk.bf16.mxu0 %vm387_vm0, %v1458_v4 }
  0x60   : > { %1305 = vmatmul.mubr.msk.bf16.gmra.mxu0 %vm387_vm0, %v1458_v4 }
  0x8d   : > { %v370_v8 = vpop.permute.xlu0 %369 }
  0x8e   : > { %v360_v9 = vpop.permute.xlu1 %359 }
  0x91   : > { %v375_v13 = vpop.permute.xlu0 %374 }
  0x92   : > { %v365_v14 = vpop.permute.xlu1 %364 }
  0x95   : > { %v514_v38 = vpop.permute.xlu0 %513 }
  0x96   : > { %v519_v39 = vpop.permute.xlu1 %518 }
  0x99   : > { %v524_v49 = vpop.permute.xlu0 %523 }
  0x9a   : > { %v529_v50 = vpop.permute.xlu1 %528 }
 0x118   : > { %v476_v5 = vpop.f32.mrf.mxu0 }
 0x119   : > { %v477_v26 = vadd.f32 %v476_v5, %v360_v9 }
 0x11a   : > { %v478_v6 = vpop.f32.mrf.mxu0 }
 0x11b   : > { %v479_v0 = vadd.f32 %v478_v6, %v360_v9 }
 0x11c   : > { %v480_v7 = vpop.f32.mrf.mxu0 }
 0x11d   : > { %v481_v22 = vadd.f32 %v480_v7, %v365_v14 }
 0x11e   : > { %v482_v10 = vpop.f32.mrf.mxu0 }
 0x11f   : > { %v483_v16 = vadd.f32 %v482_v10, %v365_v14  ;;  %v495_v27 = vpack.c.bf16 %v481_v22, %v477_v26 }
 0x120   : > { %v486_v11 = vpop.f32.mrf.mxu0 }
 0x121   : > { %v487_v18 = vadd.f32 %v486_v11, %v370_v8  ;;  %v496_v24 = vpack.c.bf16 %v483_v16, %v479_v0 }
 0x122   : > { %v488_v12 = vpop.f32.mrf.mxu0 }
 0x123   : > { %v489_v20 = vadd.f32 %v488_v12, %v370_v8 }
 0x124   : > { %v490_v15 = vpop.f32.mrf.mxu0 }
 0x125   : > { %v491_v17 = vadd.f32 %v490_v15, %v375_v13 }
 0x126   : > { %v492_v19 = vpop.f32.mrf.mxu0 }
 0x127   : > { %v493_v21 = vadd.f32 %v492_v19, %v375_v13  ;;  %v497_v23 = vpack.c.bf16 %v491_v17, %v487_v18  ;;  %v1768_v17 = vld [vmem:[%s2013_s6] ss:$0 sm:$0xff] }
 0x129   : > { %v498_v25 = vpack.c.bf16 %v493_v21, %v489_v20 }
 0x12b   : > { %1461 = vtanh.bf16 %v498_v25 }
 0x12c   : > { %1463 = vtanh.bf16 %v497_v23 }
 0x12d   : > { %1465 = vtanh.bf16 %v496_v24 }
 0x12e   : > { %1467 = vtanh.bf16 %v495_v27 }
 0x139   : > { %v1462_v28 = vpop.eup %1461 }
 0x13a   : > { %v1464_v29 = vpop.eup %1463  ;;  %560 = vmatprep.subr.bf16.mxu1 %v1462_v28 }
 0x13b   : > { %v1466_v30 = vpop.eup %1465  ;;  %561 = vmatpush1.bf16.msra.mxu1 %v1464_v29 }
 0x13c   : > { %562 = vmatprep.subr.bf16.mxu1 %v1466_v30  ;;  %v1468_v31 = vpop.eup %1467 }
 0x13f   : > { %563 = vmatpush1.bf16.msra.mxu1 %v1468_v31 }
 0x140   : > { %1365 = vmatprep.subr.msk.bf16.mxu1 %vm541_vm1, %v609_v34 }
 0x142   : > { %1247 = vmatmul.mubr.msk.bf16.vlgmr.msra.gmra.mxu1 %vm541_vm1, %v1459_v32 }
 0x143   : > { %590 = vmatprep.mubr.bf16.mxu1 %v1565_v3  ;;  %1324 = vmatpush3.bf16.xpose.msra.mxu1 %v698_v35 }
 0x14a   : > { %1248 = vmatmul.mubr.msk.bf16.gmra.mxu1 %vm541_vm1, %v1460_v33 }
 0x202   : > { %v582_v36 = vpop.f32.mrf.mxu1 }
 0x203   : > { %v583_v40 = vadd.f32 %v582_v36, %v514_v38 }
 0x204   : > { %v584_v37 = vpop.f32.mrf.mxu1 }
 0x205   : > { %v585_v43 = vadd.f32 %v584_v37, %v514_v38 }
 0x206   : > { %v586_v3 = vpop.f32.mrf.mxu1 }
 0x207   : > { %v587_v41 = vadd.f32 %v586_v3, %v519_v39 }
 0x208   : > { %v588_v42 = vpop.f32.mrf.mxu1 }
 0x209   : > { %v601_v44 = vpack.c.bf16 %v587_v41, %v583_v40  ;;  %v589_v45 = vadd.f32 %v588_v42, %v519_v39 }
 0x20a   : > { %v592_v46 = vpop.f32.mrf.mxu1 }
 0x20b   : > { %1469 = vtanh.bf16 %v601_v44  ;;  %v602_v47 = vpack.c.bf16 %v589_v45, %v585_v43  ;;  %v593_v52 = vadd.f32 %v592_v46, %v524_v49 }
 0x20c   : > { %v594_v48 = vpop.f32.mrf.mxu1 }
 0x20d   : > { %1471 = vtanh.bf16 %v602_v47  ;;  %v595_v55 = vadd.f32 %v594_v48, %v524_v49 }
 0x20e   : > { %v596_v51 = vpop.f32.mrf.mxu1 }
 0x20f   : > { %v597_v53 = vadd.f32 %v596_v51, %v529_v50 }
 0x210   : > { %v598_v54 = vpop.f32.mrf.mxu1 }
 0x211   : > { %v603_v56 = vpack.c.bf16 %v597_v53, %v593_v52  ;;  %v599_v57 = vadd.f32 %v598_v54, %v529_v50 }
 0x213   : > { %1473 = vtanh.bf16 %v603_v56  ;;  %v604_v58 = vpack.c.bf16 %v599_v57, %v595_v55 }
 0x215   : > { %1475 = vtanh.bf16 %v604_v58 }
 0x219   : > { %v1470_v59 = vpop.eup %1469 }
 0x21a   : > { %617 = vxpose.xlu0.c.b16.start [1/2] (short) %v1470_v59, 128 }
 0x21b   : > { %v1472_v60 = vpop.eup %1471 }
 0x21c   : > { %633 = vxpose.xlu1.c.b16.start [1/2] (short) %v1472_v60, 128 }
 0x221   : > { %v1474_v61 = vpop.eup %1473 }
 0x222   : > { %618 = vxpose.xlu0.c.b16.end [2/2] (short) %v1474_v61, 128 }
 0x223   : > { %v1476_v62 = vpop.eup %1475 }
 0x224   : > { %634 = vxpose.xlu1.c.b16.end [2/2] (short) %v1476_v62, 128 }
 0x280   : > { %v625_v63 = vpop.trf.xlu0 }
 0x281   : > { %1325 = vmatprep.mubr.msk.bf16.mxu1 %vm541_vm1, %v625_v63 }
 0x282   : > { %v641_v5 = vpop.trf.xlu1 }
 0x284   : > { %v626_v1 = vpop.trf.xlu0 }
 0x285   : > { %1326 = vmatmul.mubr.msk.bf16.vlgmr.msra.gmra.mxu1 %vm541_vm1, %v626_v1 }
 0x286   : > { %v642_v8 = vpop.trf.xlu1 }
 0x288   : > { %v627_v2 = vpop.trf.xlu0 }
 0x289   : > { %1329 = vmatprep.mubr.msk.bf16.mxu1 %vm541_vm1, %v627_v2 }
 0x28a   : > { %v643_v10 = vpop.trf.xlu1 }
 0x28c   : > { %v628_v4 = vpop.trf.xlu0 }
 0x28d   : > { %1330 = vmatmul.mubr.msk.bf16.gmra.mxu1 %vm541_vm1, %v628_v4 }
 0x28e   : > { %v644_v12 = vpop.trf.xlu1 }
 0x290   : > { %v629_v6 = vpop.trf.xlu0 }
 0x291   : > { %1333 = vmatprep.mubr.msk.bf16.mxu1 %vm541_vm1, %v629_v6 }
 0x292   : > { %v645_v13 = vpop.trf.xlu1 }
 0x294   : > { %v630_v7 = vpop.trf.xlu0 }
 0x295   : > { %1334 = vmatmul.mubr.msk.bf16.gmra.mxu1 %vm541_vm1, %v630_v7 }
 0x296   : > { %v646_v14 = vpop.trf.xlu1 }
 0x298   : > { %v631_v9 = vpop.trf.xlu0 }
 0x299   : > { %1337 = vmatprep.mubr.msk.bf16.mxu1 %vm541_vm1, %v631_v9 }
 0x29a   : > { %v647_v15 = vpop.trf.xlu1 }
 0x29c   : > { %v632_v11 = vpop.trf.xlu0 }
 0x29d   : > { %1338 = vmatmul.mubr.msk.bf16.gmra.mxu1 %vm541_vm1, %v632_v11 }
 0x29e   : > { %1341 = vmatprep.mubr.msk.bf16.mxu1 %vm541_vm1, %v641_v5  ;;  %v648_v16 = vpop.trf.xlu1 }
 0x2a5   : > { %1342 = vmatmul.mubr.msk.bf16.gmra.mxu1 %vm541_vm1, %v642_v8 }
 0x2a6   : > { %1345 = vmatprep.mubr.msk.bf16.mxu1 %vm541_vm1, %v643_v10 }
 0x2ad   : > { %1346 = vmatmul.mubr.msk.bf16.gmra.mxu1 %vm541_vm1, %v644_v12 }
 0x2ae   : > { %1349 = vmatprep.mubr.msk.bf16.mxu1 %vm541_vm1, %v645_v13 }
 0x2b5   : > { %1350 = vmatmul.mubr.msk.bf16.gmra.mxu1 %vm541_vm1, %v646_v14 }
 0x2b6   : > { %1353 = vmatprep.mubr.msk.bf16.mxu1 %vm541_vm1, %v647_v15 }
 0x2bd   : > { %1354 = vmatmul.mubr.msk.bf16.gmra.mxu1 %vm541_vm1, %v648_v16 }
 0x345   : > { %v1327_v18 = vpop.f32.mrf.mxu1 }
 0x346   : > { %v743_v19 = vadd.f32 %v1327_v18, %v1768_v17 }
 0x347   : > { %v734_v0 = vpop.f32.mrf.mxu1 }
 0x348   : > { %864 = vst.msk [vmem:[%s1771_s14 + $0x10] sm:$0xff] %vm861_vm2, %v743_v19  ;;  %v735_v20 = vadd.f32 %v1768_v17, %v734_v0 }
 0x349   : > { %v1328_v21 = vpop.f32.mrf.mxu1 }
 0x34a   : > { %862 = vst.msk [vmem:[%s1771_s14] sm:$0xff] %vm861_vm2, %v735_v20  ;;  %v746_v22 = vadd.f32 %v1328_v21, %v1768_v17 }
 0x34b   : > { %v737_v23 = vpop.f32.mrf.mxu1 }
 0x34c   : > { %865 = vst.msk [vmem:[%s1771_s14 + $0x18] sm:$0xff] %vm861_vm2, %v746_v22  ;;  %v738_v24 = vadd.f32 %v1768_v17, %v737_v23 }
 0x34d   : > { %v1331_v25 = vpop.f32.mrf.mxu1 }
 0x34e   : > { %863 = vst.msk [vmem:[%s1771_s14 + $0x8] sm:$0xff] %vm861_vm2, %v738_v24  ;;  %v759_v26 = vadd.f32 %v1331_v25, %v1768_v17 }
 0x34f   : > { %v750_v27 = vpop.f32.mrf.mxu1 }
 0x350   : > { %868 = vst.msk [vmem:[%s1771_s14 + $0x30] sm:$0xff] %vm861_vm2, %v759_v26  ;;  %v751_v28 = vadd.f32 %v1768_v17, %v750_v27 }
 0x351   : > { %v1332_v29 = vpop.f32.mrf.mxu1 }
 0x352   : > { %866 = vst.msk [vmem:[%s1771_s14 + $0x20] sm:$0xff] %vm861_vm2, %v751_v28  ;;  %v762_v30 = vadd.f32 %v1332_v29, %v1768_v17 }
 0x353   : > { %v753_v31 = vpop.f32.mrf.mxu1 }
 0x354   : > { %869 = vst.msk [vmem:[%s1771_s14 + $0x38] sm:$0xff] %vm861_vm2, %v762_v30  ;;  %v754_v32 = vadd.f32 %v1768_v17, %v753_v31 }
 0x355   : > { %v1335_v33 = vpop.f32.mrf.mxu1 }
 0x356   : > { %867 = vst.msk [vmem:[%s1771_s14 + $0x28] sm:$0xff] %vm861_vm2, %v754_v32  ;;  %v775_v34 = vadd.f32 %v1335_v33, %v1768_v17 }
 0x357   : > { %v766_v35 = vpop.f32.mrf.mxu1 }
 0x358   : > { %872 = vst.msk [vmem:[%s1771_s14 + $0x50] sm:$0xff] %vm861_vm2, %v775_v34  ;;  %v767_v36 = vadd.f32 %v1768_v17, %v766_v35 }
 0x359   : > { %v1336_v37 = vpop.f32.mrf.mxu1 }
 0x35a   : > { %870 = vst.msk [vmem:[%s1771_s14 + $0x40] sm:$0xff] %vm861_vm2, %v767_v36  ;;  %v778_v38 = vadd.f32 %v1336_v37, %v1768_v17 }
 0x35b   : > { %v769_v39 = vpop.f32.mrf.mxu1 }
 0x35c   : > { %873 = vst.msk [vmem:[%s1771_s14 + $0x58] sm:$0xff] %vm861_vm2, %v778_v38  ;;  %v770_v3 = vadd.f32 %v1768_v17, %v769_v39 }
 0x35d   : > { %v1339_v40 = vpop.f32.mrf.mxu1 }
 0x35e   : > { %871 = vst.msk [vmem:[%s1771_s14 + $0x48] sm:$0xff] %vm861_vm2, %v770_v3  ;;  %v791_v41 = vadd.f32 %v1339_v40, %v1768_v17 }
 0x35f   : > { %v782_v42 = vpop.f32.mrf.mxu1 }
 0x360   : > { %876 = vst.msk [vmem:[%s1771_s14 + $0x70] sm:$0xff] %vm861_vm2, %v791_v41  ;;  %v783_v43 = vadd.f32 %v1768_v17, %v782_v42 }
 0x361   : > { %v1340_v44 = vpop.f32.mrf.mxu1 }
 0x362   : > { %874 = vst.msk [vmem:[%s1771_s14 + $0x60] sm:$0xff] %vm861_vm2, %v783_v43  ;;  %v794_v45 = vadd.f32 %v1340_v44, %v1768_v17 }
 0x363   : > { %v785_v46 = vpop.f32.mrf.mxu1 }
 0x364   : > { %877 = vst.msk [vmem:[%s1771_s14 + $0x78] sm:$0xff] %vm861_vm2, %v794_v45  ;;  %v786_v47 = vadd.f32 %v1768_v17, %v785_v46 }
 0x365   : > { %v1343_v48 = vpop.f32.mrf.mxu1 }
 0x366   : > { %875 = vst.msk [vmem:[%s1771_s14 + $0x68] sm:$0xff] %vm861_vm2, %v786_v47  ;;  %v807_v49 = vadd.f32 %v1343_v48, %v1768_v17 }
 0x367   : > { %v798_v50 = vpop.f32.mrf.mxu1 }
 0x368   : > { %880 = vst.msk [vmem:[%s1771_s14 + $0x90] sm:$0xff] %vm861_vm2, %v807_v49  ;;  %v799_v51 = vadd.f32 %v1768_v17, %v798_v50 }
 0x369   : > { %v1344_v52 = vpop.f32.mrf.mxu1 }
 0x36a   : > { %878 = vst.msk [vmem:[%s1771_s14 + $0x80] sm:$0xff] %vm861_vm2, %v799_v51  ;;  %v810_v53 = vadd.f32 %v1344_v52, %v1768_v17 }
 0x36b   : > { %v801_v54 = vpop.f32.mrf.mxu1 }
 0x36c   : > { %881 = vst.msk [vmem:[%s1771_s14 + $0x98] sm:$0xff] %vm861_vm2, %v810_v53  ;;  %v802_v55 = vadd.f32 %v1768_v17, %v801_v54 }
 0x36d   : > { %v1347_v56 = vpop.f32.mrf.mxu1 }
 0x36e   : > { %879 = vst.msk [vmem:[%s1771_s14 + $0x88] sm:$0xff] %vm861_vm2, %v802_v55  ;;  %v823_v57 = vadd.f32 %v1347_v56, %v1768_v17 }
 0x36f   : > { %v814_v58 = vpop.f32.mrf.mxu1 }
 0x370   : > { %884 = vst.msk [vmem:[%s1771_s14 + $0xb0] sm:$0xff] %vm861_vm2, %v823_v57  ;;  %v815_v59 = vadd.f32 %v1768_v17, %v814_v58 }
 0x371   : > { %v1348_v60 = vpop.f32.mrf.mxu1 }
 0x372   : > { %882 = vst.msk [vmem:[%s1771_s14 + $0xa0] sm:$0xff] %vm861_vm2, %v815_v59  ;;  %v826_v61 = vadd.f32 %v1348_v60, %v1768_v17 }
 0x373   : > { %v817_v62 = vpop.f32.mrf.mxu1 }
 0x374   : > { %885 = vst.msk [vmem:[%s1771_s14 + $0xb8] sm:$0xff] %vm861_vm2, %v826_v61  ;;  %v818_v63 = vadd.f32 %v1768_v17, %v817_v62 }
 0x375   : > { %v1351_v1 = vpop.f32.mrf.mxu1 }
 0x376   : > { %883 = vst.msk [vmem:[%s1771_s14 + $0xa8] sm:$0xff] %vm861_vm2, %v818_v63  ;;  %v839_v2 = vadd.f32 %v1351_v1, %v1768_v17 }
 0x377   : > { %v830_v4 = vpop.f32.mrf.mxu1 }
 0x378   : > { %888 = vst.msk [vmem:[%s1771_s14 + $0xd0] sm:$0xff] %vm861_vm2, %v839_v2  ;;  %v831_v5 = vadd.f32 %v1768_v17, %v830_v4 }
 0x379   : > { %v1352_v6 = vpop.f32.mrf.mxu1 }
 0x37a   : > { %886 = vst.msk [vmem:[%s1771_s14 + $0xc0] sm:$0xff] %vm861_vm2, %v831_v5  ;;  %v842_v7 = vadd.f32 %v1352_v6, %v1768_v17 }
 0x37b   : > { %v833_v8 = vpop.f32.mrf.mxu1 }
 0x37c   : > { %889 = vst.msk [vmem:[%s1771_s14 + $0xd8] sm:$0xff] %vm861_vm2, %v842_v7  ;;  %v834_v9 = vadd.f32 %v1768_v17, %v833_v8 }
 0x37d   : > { %v1355_v10 = vpop.f32.mrf.mxu1 }
 0x37e   : > { %887 = vst.msk [vmem:[%s1771_s14 + $0xc8] sm:$0xff] %vm861_vm2, %v834_v9  ;;  %v855_v11 = vadd.f32 %v1355_v10, %v1768_v17 }
 0x37f   : > { %v846_v12 = vpop.f32.mrf.mxu1 }
 0x380   : > { %892 = vst.msk [vmem:[%s1771_s14 + $0xf0] sm:$0xff] %vm861_vm2, %v855_v11  ;;  %v847_v13 = vadd.f32 %v1768_v17, %v846_v12 }
 0x381   : > { %v1356_v14 = vpop.f32.mrf.mxu1 }
 0x382   : > { %890 = vst.msk [vmem:[%s1771_s14 + $0xe0] sm:$0xff] %vm861_vm2, %v847_v13  ;;  %v858_v15 = vadd.f32 %v1356_v14, %v1768_v17  ;;  %900 = sbr.rel (!%p1631_p4) target bundleno = 951 (0x3b7), region = 52 }
 0x383   : > { %v849_v16 = vpop.f32.mrf.mxu1 }
 0x384   : > { %893 = vst.msk [vmem:[%s1771_s14 + $0xf8] sm:$0xff] %vm861_vm2, %v858_v15  ;;  %v850_v18 = vadd.f32 %v1768_v17, %v849_v16 }
 0x386   : > { %891 = vst.msk [vmem:[%s1771_s14 + $0xe8] sm:$0xff] %vm861_vm2, %v850_v18 }
 0x387   : > { %s2025_s24 = smov (!%p903_p8, %s902_s24), 32 }
 0x388   : > { %s1268_s19 = sshll.u32 %s2025_s24, 7 }
 0x389   : > { %p1271_p9 = scmp.eq.s32.totalorder %s1268_s19, 0 }
 0x38a   : > { %s1881_s20 = sshrl.u32 (!%p1271_p9), %s2025_s24, 5 }
 0x38b   : > { %911 = sbr.rel (%p1271_p9) target bundleno = 951 (0x3b7), region = 56  ;;  %p1272_p10 = scmp.le.s32.totalorder (!%p1271_p9), %s1881_s20, 0 }
 0x390   : > { %1190 = sbr.rel (%p1272_p10) target bundleno = 934 (0x3a6), region = 132  ;;  %s2016_s27 = smov (!%p1272_p10), %s1875_s18 }
 0x391   : > { %s2017_s9 = smov (!%p1272_p10), %s1771_s14  ;;  %s1890_s10 = smov (!%p1272_p10), 0  }
 0x392   : > { %s1892_s21 = smov (!%p1272_p10), 0  }
 0x395 LB: >> { %v1036_v17 = vld [vmem:[%s1539_s9] sm:$0xff]  ;;  %v1038_v19 = vld [vmem:[%s1539_s9 + $0x8] sm:$0xff]  ;;  %v1040_v0 = vld [vmem:[%s1539_s9 + $0x10] sm:$0xff]  ;;  %s1100_s22 = sadd.s32 1, %s1543_s10  ;;  %s1030_s21 = sadd.s32 1, %s1547_s21   ;;  %s1547_s21 = sphi %s1892_s21, %s1030_s21   ;;  %s1543_s10 = sphi %s1890_s10, %s2020_s10   ;;  %s1539_s9 = sphi %s2017_s9, %s2019_s9   ;;  %s1535_s27 = sphi %s2016_s27, %s2018_s27  }
 0x396   : >> { %1037 = vst [vmem:[%s1535_s27] sm:$0xff] %v1036_v17  ;;  %1039 = vst [vmem:[%s1535_s27 + $0x8] sm:$0xff] %v1038_v19  ;;  %v1042_v20 = vld [vmem:[%s1539_s9 + $0x18] sm:$0xff]  ;;  %v1044_v21 = vld [vmem:[%s1539_s9 + $0x20] sm:$0xff]  ;;  %p1101_p11 = scmp.ge.s32.totalorder %s1100_s22, %s1881_s20  ;;  %p1029_p12 = scmp.ge.s32.totalorder %s1030_s21, %s1881_s20 }
 0x397   : >> { %1041 = vst [vmem:[%s1535_s27 + $0x10] sm:$0xff] %v1040_v0  ;;  %v1046_v22 = vld [vmem:[%s1539_s9 + $0x28] sm:$0xff]  ;;  %1043 = vst [vmem:[%s1535_s27 + $0x18] sm:$0xff] %v1042_v20  ;;  %v1048_v23 = vld [vmem:[%s1539_s9 + $0x30] sm:$0xff] }
 0x398   : >> { %1045 = vst [vmem:[%s1535_s27 + $0x20] sm:$0xff] %v1044_v21  ;;  %1047 = vst [vmem:[%s1535_s27 + $0x28] sm:$0xff] %v1046_v22  ;;  %v1050_v24 = vld [vmem:[%s1539_s9 + $0x38] sm:$0xff]  ;;  %v1052_v25 = vld [vmem:[%s1539_s9 + $0x40] sm:$0xff]  ;;  %s2027_s22 = smov (%p1101_p11, %s1100_s22), 0 }
 0x399   : >> { %1049 = vst [vmem:[%s1535_s27 + $0x30] sm:$0xff] %v1048_v23  ;;  %1051 = vst [vmem:[%s1535_s27 + $0x38] sm:$0xff] %v1050_v24  ;;  %v1054_v26 = vld [vmem:[%s1539_s9 + $0x48] sm:$0xff]  ;;  %v1056_v27 = vld [vmem:[%s1539_s9 + $0x50] sm:$0xff]  ;;  %s1273_s23 = sshll.u32 %s2027_s22, 8  ;;  %s2020_s10 = smov %s2027_s22 }
 0x39a   : >> { %1053 = vst [vmem:[%s1535_s27 + $0x40] sm:$0xff] %v1052_v25  ;;  %v1058_v28 = vld [vmem:[%s1539_s9 + $0x58] sm:$0xff]  ;;  %1055 = vst [vmem:[%s1535_s27 + $0x48] sm:$0xff] %v1054_v26  ;;  %v1060_v29 = vld [vmem:[%s1539_s9 + $0x60] sm:$0xff]  ;;  %s1948_s26 = scalar_lea.vmem %s1771_s14, %s1273_s23 [#allocation2]   ;;  %s1106_s29 = scalar_lea.vmem %s1875_s18, %s1273_s23  }
 0x39b   : >> { %1057 = vst [vmem:[%s1535_s27 + $0x50] sm:$0xff] %v1056_v27  ;;  %1059 = vst [vmem:[%s1535_s27 + $0x58] sm:$0xff] %v1058_v28  ;;  %v1062_v30 = vld [vmem:[%s1539_s9 + $0x68] sm:$0xff]  ;;  %v1064_v31 = vld [vmem:[%s1539_s9 + $0x70] sm:$0xff] }
 0x39c   : >> { %1061 = vst [vmem:[%s1535_s27 + $0x60] sm:$0xff] %v1060_v29  ;;  %1063 = vst [vmem:[%s1535_s27 + $0x68] sm:$0xff] %v1062_v30  ;;  %v1066_v32 = vld [vmem:[%s1539_s9 + $0x78] sm:$0xff]  ;;  %v1068_v33 = vld [vmem:[%s1539_s9 + $0x80] sm:$0xff] }
 0x39d   : >> { %1065 = vst [vmem:[%s1535_s27 + $0x70] sm:$0xff] %v1064_v31  ;;  %v1070_v34 = vld [vmem:[%s1539_s9 + $0x88] sm:$0xff]  ;;  %1067 = vst [vmem:[%s1535_s27 + $0x78] sm:$0xff] %v1066_v32  ;;  %v1072_v35 = vld [vmem:[%s1539_s9 + $0x90] sm:$0xff] }
 0x39e   : >> { %1069 = vst [vmem:[%s1535_s27 + $0x80] sm:$0xff] %v1068_v33  ;;  %1071 = vst [vmem:[%s1535_s27 + $0x88] sm:$0xff] %v1070_v34  ;;  %v1074_v36 = vld [vmem:[%s1539_s9 + $0x98] sm:$0xff]  ;;  %v1076_v37 = vld [vmem:[%s1539_s9 + $0xa0] sm:$0xff] }
 0x39f   : >> { %1073 = vst [vmem:[%s1535_s27 + $0x90] sm:$0xff] %v1072_v35  ;;  %1075 = vst [vmem:[%s1535_s27 + $0x98] sm:$0xff] %v1074_v36  ;;  %v1078_v38 = vld [vmem:[%s1539_s9 + $0xa8] sm:$0xff]  ;;  %v1080_v39 = vld [vmem:[%s1539_s9 + $0xb0] sm:$0xff] }
 0x3a0   : >> { %1077 = vst [vmem:[%s1535_s27 + $0xa0] sm:$0xff] %v1076_v37  ;;  %v1082_v3 = vld [vmem:[%s1539_s9 + $0xb8] sm:$0xff]  ;;  %1079 = vst [vmem:[%s1535_s27 + $0xa8] sm:$0xff] %v1078_v38  ;;  %v1084_v40 = vld [vmem:[%s1539_s9 + $0xc0] sm:$0xff] }
 0x3a1   : >> { %1081 = vst [vmem:[%s1535_s27 + $0xb0] sm:$0xff] %v1080_v39  ;;  %1083 = vst [vmem:[%s1535_s27 + $0xb8] sm:$0xff] %v1082_v3  ;;  %v1086_v41 = vld [vmem:[%s1539_s9 + $0xc8] sm:$0xff]  ;;  %v1088_v42 = vld [vmem:[%s1539_s9 + $0xd0] sm:$0xff]  ;;  %1032 = sbr.rel (!%p1029_p12) target bundleno = 917 (0x395), region = 138 }
 0x3a2   : >> { %1085 = vst [vmem:[%s1535_s27 + $0xc0] sm:$0xff] %v1084_v40  ;;  %1087 = vst [vmem:[%s1535_s27 + $0xc8] sm:$0xff] %v1086_v41  ;;  %v1090_v43 = vld [vmem:[%s1539_s9 + $0xd8] sm:$0xff]  ;;  %v1092_v44 = vld [vmem:[%s1539_s9 + $0xe0] sm:$0xff] }
 0x3a3   : >> { %1089 = vst [vmem:[%s1535_s27 + $0xd0] sm:$0xff] %v1088_v42  ;;  %v1094_v45 = vld [vmem:[%s1539_s9 + $0xe8] sm:$0xff]  ;;  %1091 = vst [vmem:[%s1535_s27 + $0xd8] sm:$0xff] %v1090_v43  ;;  %v1096_v46 = vld [vmem:[%s1539_s9 + $0xf0] sm:$0xff] }
 0x3a4   : >> { %1093 = vst [vmem:[%s1535_s27 + $0xe0] sm:$0xff] %v1092_v44  ;;  %1095 = vst [vmem:[%s1535_s27 + $0xe8] sm:$0xff] %v1094_v45  ;;  %v1098_v47 = vld [vmem:[%s1539_s9 + $0xf8] sm:$0xff]  ;;  %s2019_s9 = smov %s1948_s26 }
 0x3a5   : >> { %1097 = vst [vmem:[%s1535_s27 + $0xf0] sm:$0xff] %v1096_v46  ;;  %1099 = vst [vmem:[%s1535_s27 + $0xf8] sm:$0xff] %v1098_v47  ;;  %s2018_s27 = smov %s1106_s29 }
 0x3a6 PF: > { %s1989_s30 = sand.u32 31, %s2025_s24   ;;  %s1284_s11 = sshll.u32 %s1881_s20, 8 }
 0x3a7   : > { %s1111_s12 = scalar_lea.vmem %s1771_s14, %s1284_s11 [#allocation2]   ;;  %s1113_s13 = scalar_lea.vmem %s1875_s18, %s1284_s11  }
 0x3a8   : > { %p1278_p13 = scmp.le.s32.totalorder %s1989_s30, 0 }
 0x3a9   : > { %s1549_s15 = smov (!%p1278_p13), %s1113_s13   ;;  %s1553_s16 = smov (!%p1278_p13), %s1111_s12  }
 0x3aa   : > { %1204 = sbr.rel (%p1278_p13) target bundleno = 951 (0x3b7), region = 143  ;;  %s1557_s17 = smov (!%p1278_p13), 0  }
 0x3ab   : > { %s1561_s19 = smov (!%p1278_p13), 0  }
 0x3af LB: >> { %v1123_v48 = vld [vmem:[%s1555_s16] sm:$0xff]  ;;  %s1125_s24 = sadd.s32 1, %s1559_s17  ;;  %s1117_s19 = sadd.s32 1, %s1563_s19   ;;  %s1563_s19 = sphi %s1561_s19, %s1117_s19   ;;  %s1559_s17 = sphi %s1557_s17, %s1558_s17   ;;  %s1555_s16 = sphi %s1553_s16, %s1130_s16   ;;  %s1551_s15 = sphi %s1549_s15, %s1131_s15  }
 0x3b0   : >> { %1124 = vst [vmem:[%s1551_s15] sm:$0xff] %v1123_v48  ;;  %p1126_p0 = scmp.ge.s32.totalorder %s1125_s24, %s1989_s30  ;;  %p1116_p1 = scmp.ge.s32.totalorder %s1117_s19, %s1989_s30 }
 0x3b2   : >> { %s2029_s24 = smov (%p1126_p0, %s1125_s24), 0  ;;  %1119 = sbr.rel (!%p1116_p1) target bundleno = 943 (0x3af), region = 149 }
 0x3b3   : >> { %s1279_s14 = sshll.u32 %s2029_s24, 3  ;;  %s1558_s17 = smov %s2029_s24  }
 0x3b4   : >> { %s1130_s16 = scalar_lea.vmem %s1111_s12, %s1279_s14 [#allocation2]   ;;  %s1131_s15 = scalar_lea.vmem %s1113_s13, %s1279_s14  }
 0x3b7 PF: > { %p14_p2 = scmp.ge.s32.totalorder %s1621_s28, 4   ;;  %s2021_s24 = smov %s1527_s25 }
 0x3b8   : > { %s2022_s25 = smov %s1629_s8  ;;  %s2023_s26 = smov %s1621_s28 }
 0x3b9   :  { %16 = sbr.rel (!%p14_p2) target bundleno = 2 (0x2), region = 160 }

</bundles_post_ra>
